<compile_context>
chip_gen: v6e
topology: v6e:2x2x1
jax: 0.10.0
libtpu: 0.0.40
codegen_flags: <defaults>
</compile_context>

<pallas_src>
import jax
import jax.numpy as jnp
from jax.experimental import pallas as pl
from jax.experimental.pallas import tpu as pltpu


def _round_up(x, m):
    return ((x + m - 1) // m) * m


def _tpu_hw():
    """(physical VMEM bytes, MXU M-dim row multiple) for this backend."""
    kind = ""
    try:
        kind = jax.devices()[0].device_kind.lower()
    except Exception:
        pass
    vmem = None
    try:
        vmem = int(getattr(pltpu.get_tpu_info(), "vmem_capacity_bytes", 0)) or None
    except Exception:
        vmem = None
    if vmem is None:
        if "v7" in kind or "7x" in kind:
            vmem = 64 * 2**20
        elif any(g in kind for g in ("v6", "v5", "v4")):
            vmem = 128 * 2**20
        else:
            vmem = 64 * 2**20  # conservative default
    row_mult = 256 if ("v6" in kind or "v7" in kind or "7x" in kind) else 128
    return vmem, row_mult


def _choose_batch(N, S, E, Hp, vmem_budget, row_mult):
    """Texts per grid step: fill the MXU M dim while fitting the VMEM budget."""
    per_text = (
        2 * S * E * 2            # x block, bf16, double-buffered
        + S * E * 4              # f32 copy of x for the VPU pools
        + 2 * S * E * 4          # a1*x / a2*x products
        + 2 * S * 2 * Hp * 4     # fused (S, 2Hp) matmul result + its slices
        + 2 * S * Hp * 4         # tanh activations e1 / e2
        + 2 * Hp * 4             # output block, f32, double-buffered
    )
    fixed = 2 * (5 * E * Hp * 2 + 5 * Hp * 4)   # weights/biases (double-buffered)
    fixed += 2 * 2**20                          # compiler internal-scratch slack
    avail = max(vmem_budget - fixed, per_text)
    b_mem = max(1, avail // per_text)

    row_target = _round_up(1024, row_mult)      # 512-2048 rows into the MXU M dim
    b_rows = max(1, row_target // S)

    B = int(min(b_rows, b_mem, N))
    if N >= 16:                                  # keep >=2 grid steps (v7x megacore)
        B = min(B, _round_up(-(-N // 2), 8))
    if B < N:                                    # (8,128) rule on the (B, Hp) out block
        B = _round_up(B, 8)
        if B >= N:
            B = N
    return max(int(B), 1)


def _news_encoder_kernel(
    x_ref,      # (B, S, E)    bf16  hidden states for B texts
    w13_ref,    # (E, 2*Hp)    bf16  [att_pool1.fc1 | att_pool2.fc1 word half]
    b1_ref,     # (1, Hp)      f32
    w2_ref,     # (1, Hp)      f32   att_pool1.att_fc2 row (zero-padded lanes)
    w3a_ref,    # (E, Hp)      bf16  att_pool2.fc1 news half
    b3_ref,     # (1, Hp)      f32
    w4_ref,     # (1, Hp)      f32   att_pool2.att_fc2 row (zero-padded lanes)
    wfc_ref,    # (2*E, Hp)    bf16  fc, news/word halves stacked on K
    bfc_ref,    # (1, Hp)      f32
    out_ref,    # (B, Hp)      f32
):
    B, S, E = x_ref.shape
    Hp = w3a_ref.shape[1]

    x = x_ref[...]                                    # bf16 for the MXU
    x2d = x.reshape(B * S, E)
    xf = x.astype(jnp.float32)                        # f32 copy for VPU pooling

    # Single MXU pass over the word states feeds both attention pools.
    xw = jnp.dot(x2d, w13_ref[...], preferred_element_type=jnp.float32)  # (B*S, 2Hp)
    xw1 = xw[:, :Hp].reshape(B, S, Hp)
    t_x = xw[:, Hp:].reshape(B, S, Hp)

    # ---- AttentionPooling 1 (mask all-ones; fc2 bias cancels in softmax) ----
    e1 = jnp.tanh(xw1 + b1_ref[...])
    logit1 = jnp.sum(e1 * w2_ref[...], axis=-1, keepdims=True)   # (B,S,1)
    a1 = jnp.exp(logit1 - jnp.max(logit1, axis=1, keepdims=True))
    a1 = a1 / (jnp.sum(a1, axis=1, keepdims=True) + 1e-8)
    news = jnp.sum(a1 * xf, axis=1)                              # (B,E) f32

    # ---- AttentionPooling 2 over [news ; x] (concat removed via split weights) ----
    t_news = jnp.dot(news.astype(jnp.bfloat16), w3a_ref[...],
                     preferred_element_type=jnp.float32)         # (B,Hp)
    e2 = jnp.tanh(t_x + t_news[:, None, :] + b3_ref[...])
    logit2 = jnp.sum(e2 * w4_ref[...], axis=-1, keepdims=True)   # (B,S,1)
    a2 = jnp.exp(logit2 - jnp.max(logit2, axis=1, keepdims=True))
    a2 = a2 / (jnp.sum(a2, axis=1, keepdims=True) + 1e-8)

    s2 = jnp.sum(a2, axis=1)                                     # (B,1)
    pooled = jnp.concatenate(
        [news * s2, jnp.sum(a2 * xf, axis=1)], axis=-1)          # (B,2E) f32

    out = jnp.dot(pooled.astype(jnp.bfloat16), wfc_ref[...],
                  preferred_element_type=jnp.float32) + bfc_ref[...]  # (B,Hp)
    out_ref[...] = out.astype(out_ref.dtype)


@jax.jit
def news_encoder_single_list(last_state, params):
    """Encode one candidate list of N texts: (N, S, E) -> (N, H)."""
    N, S, E = last_state.shape
    H = params["w1"].shape[1]
    Hp = _round_up(H, 128)                       # lane-dense hidden / output width

    vmem_phys, row_mult = _tpu_hw()
    vmem_limit = int(vmem_phys * 0.8)            # ~51 MiB on v7x, ~102 MiB on v5e/v6e
    vmem_limit = max(vmem_limit, min(vmem_phys, 32 * 2**20))

    B = _choose_batch(N, S, E, Hp, vmem_limit, row_mult)
    n_steps = -(-N // B)
    N_pad = n_steps * B

    bf16, f32 = jnp.bfloat16, jnp.float32
    x = last_state.astype(bf16)
    if N_pad != N:
        x = jnp.pad(x, ((0, N_pad - N), (0, 0), (0, 0)))

    pad_h = lambda a: jnp.pad(a.astype(f32), ((0, 0), (0, Hp - H)))
    w13 = jnp.concatenate(
        [pad_h(params["w1"]), pad_h(params["w3"][E:])], axis=1).astype(bf16)  # (E,2Hp)
    w3a = pad_h(params["w3"][:E]).astype(bf16)                                # (E,Hp)
    wfc = pad_h(params["wfc"]).astype(bf16)                                   # (2E,Hp)
    b1 = pad_h(params["b1"])
    w2 = pad_h(params["w2"])
    b3 = pad_h(params["b3"])
    w4 = pad_h(params["w4"])
    bfc = pad_h(params["bfc"])
    # att_fc2 biases (b2/b4) cancel exactly under max-subtracted softmax -> dropped.

    const = lambda r, c: pl.BlockSpec((r, c), lambda i: (0, 0))
    # NOTE: the grid-invariant weight specs could be single-buffered via
    # pipeline_mode=pl.Buffered(1); kept at the default for portability and
    # accounted for (x2) in the VMEM budget instead.

    out = pl.pallas_call(
        _news_encoder_kernel,
        out_shape=jax.ShapeDtypeStruct((N_pad, Hp), jnp.float32),
        grid=(n_steps,),
        in_specs=[
            pl.BlockSpec((B, S, E), lambda i: (i, 0, 0)),   # x
            const(E, 2 * Hp),   # w13 (= [w1 | w3 word half])
            const(1, Hp),       # b1
            const(1, Hp),       # w2 row
            const(E, Hp),       # w3a (w3 news half)
            const(1, Hp),       # b3
            const(1, Hp),       # w4 row
            const(2 * E, Hp),   # wfc (= [fc news half ; fc word half])
            const(1, Hp),       # bfc
        ],
        out_specs=pl.BlockSpec((B, Hp), lambda i: (i, 0)),
        compiler_params=pltpu.CompilerParams(
            dimension_semantics=("parallel",),
            vmem_limit_bytes=vmem_limit,
        ),
    )(x, w13, b1, w2, w3a, b3, w4, wfc, bfc)

    return out[:N, :H]


def news_encoder_forward(candidate_hidden_states, params):
    """Mirrors NewsEncoder.forward over a Python list of per-list hidden states."""
    # TODO(synk): for many candidate lists, fuse into one pallas_call over the
    # concatenated (sum N, S, E) array (PrefetchScalarGridSpec + per-list offsets)
    # to amortize launch cost and the one-time weight HBM->VMEM DMA.
    return [news_encoder_single_list(hs, params) for hs in candidate_hidden_states]


# ---------------- pure-JAX reference (exact mirror of the PyTorch module) ----------------
def _ref_att_pool(x, w_in, b_in, w_row, b_sc):
    e = jnp.tanh(x @ w_in + b_in)                                   # (N,S,H)
    alpha = jnp.exp(jnp.sum(e * w_row, -1, keepdims=True) + b_sc)   # (N,S,1)
    alpha = alpha / (jnp.sum(alpha, axis=1, keepdims=True) + 1e-8)
    return jnp.sum(x * alpha, axis=1)                               # (N,D)


def _ref_forward_single(last_state, p):
    x = last_state.astype(jnp.float32)
    N, S, E = x.shape
    news = _ref_att_pool(x, p["w1"], p["b1"], p["w2"], p["b2"])      # (N,E)
    cat = jnp.concatenate(
        [jnp.broadcast_to(news[:, None, :], (N, S, E)), x], axis=-1)  # (N,S,2E)
    pooled = _ref_att_pool(cat, p["w3"], p["b3"], p["w4"], p["b4"])  # (N,2E)
    return pooled @ p["wfc"] + p["bfc"]                              # (N,H)


if __name__ == "__main__":
    # Small shapes implied by the module: N texts per candidate list, seq S,
    # embedding_dim E, hidden_dim H.
    S, E, H = 8, 32, 32

    key = jax.random.PRNGKey(0)
    keys = jax.random.split(key, 12)
    scale = 0.05
    params = {
        "w1": scale * jax.random.normal(keys[0], (E, H), jnp.float32),
        "b1": scale * jax.random.normal(keys[1], (1, H), jnp.float32),
        "w2": scale * jax.random.normal(keys[2], (1, H), jnp.float32),
        "b2": scale * jax.random.normal(keys[3], (1, 1), jnp.float32),
        "w3": scale * jax.random.normal(keys[4], (2 * E, H), jnp.float32),
        "b3": scale * jax.random.normal(keys[5], (1, H), jnp.float32),
        "w4": scale * jax.random.normal(keys[6], (1, H), jnp.float32),
        "b4": scale * jax.random.normal(keys[7], (1, 1), jnp.float32),
        "wfc": scale * jax.random.normal(keys[8], (2 * E, H), jnp.float32),
        "bfc": scale * jax.random.normal(keys[9], (1, H), jnp.float32),
    }

    # Two candidate lists of precomputed llama last-hidden-states (bf16, like a
    # real LM output).  The second list exercises the multi-step / padded path.
    candidate_hidden_states = [
        jax.random.normal(keys[10], (2, S, E), jnp.float32).astype(jnp.bfloat16),
        jax.random.normal(keys[11], (20, S, E), jnp.float32).astype(jnp.bfloat16),
    ]

    outs = news_encoder_forward(candidate_hidden_states, params)
    outs = [jax.block_until_ready(o) for o in outs]

    # Verify against the pure-JAX f32 reference (bf16 MXU inputs => loose tol).
    for hs, out in zip(candidate_hidden_states, outs):
        ref = _ref_forward_single(hs, params)
        assert out.shape == (hs.shape[0], H)
        assert jnp.allclose(out, ref, atol=3e-2, rtol=3e-2), (
            f"mismatch: max abs err {jnp.max(jnp.abs(out - ref))}"
        )

    print("KERNEL_OK")
</pallas_src>

<mosaic_0001>
module attributes {stable_mosaic.version = 11 : i64} {
  func.func @_news_encoder_kernel(%arg0: i32, %arg1: memref<2x8x32xbf16, #tpu.memory_space<vmem>>, %arg2: memref<32x256xbf16, #tpu.memory_space<vmem>>, %arg3: memref<1x128xf32, #tpu.memory_space<vmem>>, %arg4: memref<1x128xf32, #tpu.memory_space<vmem>>, %arg5: memref<32x128xbf16, #tpu.memory_space<vmem>>, %arg6: memref<1x128xf32, #tpu.memory_space<vmem>>, %arg7: memref<1x128xf32, #tpu.memory_space<vmem>>, %arg8: memref<64x128xbf16, #tpu.memory_space<vmem>>, %arg9: memref<1x128xf32, #tpu.memory_space<vmem>>, %arg10: memref<2x128xf32, #tpu.memory_space<vmem>>) attributes {dimension_semantics = [#tpu.dimension_semantics<parallel>], iteration_bounds = array<i64: 1>, scalar_prefetch = 0 : i64, scratch_operands = 0 : i64, tpu.core_type = #tpu.core_type<tc>, window_params = [{transform_indices = @transform_0, window_bounds = array<i64: 2, 8, 32>}, {pipeline_mode = #tpu.pipeline_mode<synchronous>, transform_indices = @transform_1, window_bounds = array<i64: 32, 256>}, {pipeline_mode = #tpu.pipeline_mode<synchronous>, transform_indices = @transform_2, window_bounds = array<i64: 1, 128>}, {pipeline_mode = #tpu.pipeline_mode<synchronous>, transform_indices = @transform_3, window_bounds = array<i64: 1, 128>}, {pipeline_mode = #tpu.pipeline_mode<synchronous>, transform_indices = @transform_4, window_bounds = array<i64: 32, 128>}, {pipeline_mode = #tpu.pipeline_mode<synchronous>, transform_indices = @transform_5, window_bounds = array<i64: 1, 128>}, {pipeline_mode = #tpu.pipeline_mode<synchronous>, transform_indices = @transform_6, window_bounds = array<i64: 1, 128>}, {pipeline_mode = #tpu.pipeline_mode<synchronous>, transform_indices = @transform_7, window_bounds = array<i64: 64, 128>}, {pipeline_mode = #tpu.pipeline_mode<synchronous>, transform_indices = @transform_8, window_bounds = array<i64: 1, 128>}, {transform_indices = @transform_9, window_bounds = array<i64: 2, 128>}]} {
    %c0 = arith.constant 0 : index
    %c0_0 = arith.constant 0 : index
    %c0_1 = arith.constant 0 : index
    %0 = vector.load %arg1[%c0, %c0_0, %c0_1] : memref<2x8x32xbf16, #tpu.memory_space<vmem>>, vector<2x8x32xbf16>
    %1 = vector.shape_cast %0 : vector<2x8x32xbf16> to vector<16x32xbf16>
    %2 = arith.extf %0 : vector<2x8x32xbf16> to vector<2x8x32xf32>
    %c0_2 = arith.constant 0 : index
    %c0_3 = arith.constant 0 : index
    %3 = vector.load %arg2[%c0_2, %c0_3] : memref<32x256xbf16, #tpu.memory_space<vmem>>, vector<32x256xbf16>
    %cst = arith.constant dense<0.000000e+00> : vector<16x256xf32>
    %4 = tpu.matmul %1, %3, %cst {dimension_numbers = #tpu.dot_dimension_numbers<[1], [0], [0], [1], [0, 0, 1, 1], [], []>} : vector<16x32xbf16>, vector<32x256xbf16>, vector<16x256xf32> -> vector<16x256xf32>
    %5 = vector.extract_strided_slice %4 {offsets = [0, 0], sizes = [16, 128], strides = [1, 1]} : vector<16x256xf32> to vector<16x128xf32>
    %6 = vector.shape_cast %5 : vector<16x128xf32> to vector<2x8x128xf32>
    %7 = vector.extract_strided_slice %4 {offsets = [0, 128], sizes = [16, 128], strides = [1, 1]} : vector<16x256xf32> to vector<16x128xf32>
    %8 = vector.shape_cast %7 : vector<16x128xf32> to vector<2x8x128xf32>
    %c0_4 = arith.constant 0 : index
    %c0_5 = arith.constant 0 : index
    %9 = vector.load %arg3[%c0_4, %c0_5] : memref<1x128xf32, #tpu.memory_space<vmem>>, vector<1x128xf32>
    %10 = vector.shape_cast %9 : vector<1x128xf32> to vector<1x1x128xf32>
    %11 = vector.broadcast %10 : vector<1x1x128xf32> to vector<2x8x128xf32>
    %12 = arith.addf %6, %11 : vector<2x8x128xf32>
    %13 = math.tanh %12 : vector<2x8x128xf32>
    %c0_6 = arith.constant 0 : index
    %c0_7 = arith.constant 0 : index
    %14 = vector.load %arg4[%c0_6, %c0_7] : memref<1x128xf32, #tpu.memory_space<vmem>>, vector<1x128xf32>
    %15 = vector.shape_cast %14 : vector<1x128xf32> to vector<1x1x128xf32>
    %16 = vector.broadcast %15 : vector<1x1x128xf32> to vector<2x8x128xf32>
    %17 = arith.mulf %13, %16 : vector<2x8x128xf32>
    %cst_8 = arith.constant dense<0.000000e+00> : vector<2x8xf32>
    %18 = vector.multi_reduction <add>, %17, %cst_8 [2] : vector<2x8x128xf32> to vector<2x8xf32>
    %19 = vector.shape_cast %18 : vector<2x8xf32> to vector<2x8x1xf32>
    %cst_9 = arith.constant dense<0xFF800000> : vector<2x1xf32>
    %20 = vector.multi_reduction <maximumf>, %19, %cst_9 [1] : vector<2x8x1xf32> to vector<2x1xf32>
    %21 = vector.shape_cast %20 : vector<2x1xf32> to vector<2x1x1xf32>
    %22 = vector.broadcast %21 : vector<2x1x1xf32> to vector<2x8x1xf32>
    %23 = arith.subf %19, %22 : vector<2x8x1xf32>
    %24 = math.exp %23 : vector<2x8x1xf32>
    %cst_10 = arith.constant dense<0.000000e+00> : vector<2x1xf32>
    %25 = vector.multi_reduction <add>, %24, %cst_10 [1] : vector<2x8x1xf32> to vector<2x1xf32>
    %26 = vector.shape_cast %25 : vector<2x1xf32> to vector<2x1x1xf32>
    %cst_11 = arith.constant 9.99999993E-9 : f32
    %27 = vector.broadcast %cst_11 : f32 to vector<2x1x1xf32>
    %28 = arith.addf %26, %27 : vector<2x1x1xf32>
    %29 = vector.broadcast %28 : vector<2x1x1xf32> to vector<2x8x1xf32>
    %30 = arith.divf %24, %29 : vector<2x8x1xf32>
    %31 = vector.broadcast %30 : vector<2x8x1xf32> to vector<2x8x32xf32>
    %32 = arith.mulf %31, %2 : vector<2x8x32xf32>
    %cst_12 = arith.constant dense<0.000000e+00> : vector<2x32xf32>
    %33 = vector.multi_reduction <add>, %32, %cst_12 [1] : vector<2x8x32xf32> to vector<2x32xf32>
    %34 = arith.truncf %33 : vector<2x32xf32> to vector<2x32xbf16>
    %c0_13 = arith.constant 0 : index
    %c0_14 = arith.constant 0 : index
    %35 = vector.load %arg5[%c0_13, %c0_14] : memref<32x128xbf16, #tpu.memory_space<vmem>>, vector<32x128xbf16>
    %cst_15 = arith.constant dense<0.000000e+00> : vector<2x128xf32>
    %36 = tpu.matmul %34, %35, %cst_15 {dimension_numbers = #tpu.dot_dimension_numbers<[1], [0], [0], [1], [0, 0, 1, 1], [], []>} : vector<2x32xbf16>, vector<32x128xbf16>, vector<2x128xf32> -> vector<2x128xf32>
    %37 = vector.shape_cast %36 : vector<2x128xf32> to vector<2x1x128xf32>
    %38 = vector.broadcast %37 : vector<2x1x128xf32> to vector<2x8x128xf32>
    %39 = arith.addf %8, %38 : vector<2x8x128xf32>
    %c0_16 = arith.constant 0 : index
    %c0_17 = arith.constant 0 : index
    %40 = vector.load %arg6[%c0_16, %c0_17] : memref<1x128xf32, #tpu.memory_space<vmem>>, vector<1x128xf32>
    %41 = vector.shape_cast %40 : vector<1x128xf32> to vector<1x1x128xf32>
    %42 = vector.broadcast %41 : vector<1x1x128xf32> to vector<2x8x128xf32>
    %43 = arith.addf %39, %42 : vector<2x8x128xf32>
    %44 = math.tanh %43 : vector<2x8x128xf32>
    %c0_18 = arith.constant 0 : index
    %c0_19 = arith.constant 0 : index
    %45 = vector.load %arg7[%c0_18, %c0_19] : memref<1x128xf32, #tpu.memory_space<vmem>>, vector<1x128xf32>
    %46 = vector.shape_cast %45 : vector<1x128xf32> to vector<1x1x128xf32>
    %47 = vector.broadcast %46 : vector<1x1x128xf32> to vector<2x8x128xf32>
    %48 = arith.mulf %44, %47 : vector<2x8x128xf32>
    %cst_20 = arith.constant dense<0.000000e+00> : vector<2x8xf32>
    %49 = vector.multi_reduction <add>, %48, %cst_20 [2] : vector<2x8x128xf32> to vector<2x8xf32>
    %50 = vector.shape_cast %49 : vector<2x8xf32> to vector<2x8x1xf32>
    %cst_21 = arith.constant dense<0xFF800000> : vector<2x1xf32>
    %51 = vector.multi_reduction <maximumf>, %50, %cst_21 [1] : vector<2x8x1xf32> to vector<2x1xf32>
    %52 = vector.shape_cast %51 : vector<2x1xf32> to vector<2x1x1xf32>
    %53 = vector.broadcast %52 : vector<2x1x1xf32> to vector<2x8x1xf32>
    %54 = arith.subf %50, %53 : vector<2x8x1xf32>
    %55 = math.exp %54 : vector<2x8x1xf32>
    %cst_22 = arith.constant dense<0.000000e+00> : vector<2x1xf32>
    %56 = vector.multi_reduction <add>, %55, %cst_22 [1] : vector<2x8x1xf32> to vector<2x1xf32>
    %57 = vector.shape_cast %56 : vector<2x1xf32> to vector<2x1x1xf32>
    %cst_23 = arith.constant 9.99999993E-9 : f32
    %58 = vector.broadcast %cst_23 : f32 to vector<2x1x1xf32>
    %59 = arith.addf %57, %58 : vector<2x1x1xf32>
    %60 = vector.broadcast %59 : vector<2x1x1xf32> to vector<2x8x1xf32>
    %61 = arith.divf %55, %60 : vector<2x8x1xf32>
    %cst_24 = arith.constant dense<0.000000e+00> : vector<2x1xf32>
    %62 = vector.multi_reduction <add>, %61, %cst_24 [1] : vector<2x8x1xf32> to vector<2x1xf32>
    %63 = vector.broadcast %62 : vector<2x1xf32> to vector<2x32xf32>
    %64 = arith.mulf %33, %63 : vector<2x32xf32>
    %65 = vector.broadcast %61 : vector<2x8x1xf32> to vector<2x8x32xf32>
    %66 = arith.mulf %65, %2 : vector<2x8x32xf32>
    %cst_25 = arith.constant dense<0.000000e+00> : vector<2x32xf32>
    %67 = vector.multi_reduction <add>, %66, %cst_25 [1] : vector<2x8x32xf32> to vector<2x32xf32>
    %68 = tpu.concatenate %64, %67 in 1 : vector<2x32xf32>, vector<2x32xf32> -> vector<2x64xf32>
    %69 = arith.truncf %68 : vector<2x64xf32> to vector<2x64xbf16>
    %c0_26 = arith.constant 0 : index
    %c0_27 = arith.constant 0 : index
    %70 = vector.load %arg8[%c0_26, %c0_27] : memref<64x128xbf16, #tpu.memory_space<vmem>>, vector<64x128xbf16>
    %cst_28 = arith.constant dense<0.000000e+00> : vector<2x128xf32>
    %71 = tpu.matmul %69, %70, %cst_28 {dimension_numbers = #tpu.dot_dimension_numbers<[1], [0], [0], [1], [0, 0, 1, 1], [], []>} : vector<2x64xbf16>, vector<64x128xbf16>, vector<2x128xf32> -> vector<2x128xf32>
    %c0_29 = arith.constant 0 : index
    %c0_30 = arith.constant 0 : index
    %72 = vector.load %arg9[%c0_29, %c0_30] : memref<1x128xf32, #tpu.memory_space<vmem>>, vector<1x128xf32>
    %73 = vector.broadcast %72 : vector<1x128xf32> to vector<2x128xf32>
    %74 = arith.addf %71, %73 : vector<2x128xf32>
    %c0_31 = arith.constant 0 : index
    %c0_32 = arith.constant 0 : index
    %75 = vector.load %arg10[%c0_31, %c0_32] : memref<2x128xf32, #tpu.memory_space<vmem>>, vector<2x128xf32>
    tpu.vector_store %arg10[%c0_31, %c0_32], %74 {strides = array<i32>} : memref<2x128xf32, #tpu.memory_space<vmem>>, vector<2x128xf32>,
    return
  }
  func.func @transform_0(%arg0: i32) -> (i32, i32, i32) {
    %c0_i32 = arith.constant 0 : i32
    %c0_i32_0 = arith.constant 0 : i32
    %c0_i32_1 = arith.constant 0 : i32
    return %arg0, %c0_i32, %c0_i32_0 : i32, i32, i32
  }
  func.func @transform_1(%arg0: i32) -> (i32, i32) {
    %c0_i32 = arith.constant 0 : i32
    %c0_i32_0 = arith.constant 0 : i32
    %c0_i32_1 = arith.constant 0 : i32
    return %c0_i32, %c0_i32_0 : i32, i32
  }
  func.func @transform_2(%arg0: i32) -> (i32, i32) {
    %c0_i32 = arith.constant 0 : i32
    %c0_i32_0 = arith.constant 0 : i32
    %c0_i32_1 = arith.constant 0 : i32
    return %c0_i32, %c0_i32_0 : i32, i32
  }
  func.func @transform_3(%arg0: i32) -> (i32, i32) {
    %c0_i32 = arith.constant 0 : i32
    %c0_i32_0 = arith.constant 0 : i32
    %c0_i32_1 = arith.constant 0 : i32
    return %c0_i32, %c0_i32_0 : i32, i32
  }
  func.func @transform_4(%arg0: i32) -> (i32, i32) {
    %c0_i32 = arith.constant 0 : i32
    %c0_i32_0 = arith.constant 0 : i32
    %c0_i32_1 = arith.constant 0 : i32
    return %c0_i32, %c0_i32_0 : i32, i32
  }
  func.func @transform_5(%arg0: i32) -> (i32, i32) {
    %c0_i32 = arith.constant 0 : i32
    %c0_i32_0 = arith.constant 0 : i32
    %c0_i32_1 = arith.constant 0 : i32
    return %c0_i32, %c0_i32_0 : i32, i32
  }
  func.func @transform_6(%arg0: i32) -> (i32, i32) {
    %c0_i32 = arith.constant 0 : i32
    %c0_i32_0 = arith.constant 0 : i32
    %c0_i32_1 = arith.constant 0 : i32
    return %c0_i32, %c0_i32_0 : i32, i32
  }
  func.func @transform_7(%arg0: i32) -> (i32, i32) {
    %c0_i32 = arith.constant 0 : i32
    %c0_i32_0 = arith.constant 0 : i32
    %c0_i32_1 = arith.constant 0 : i32
    return %c0_i32, %c0_i32_0 : i32, i32
  }
  func.func @transform_8(%arg0: i32) -> (i32, i32) {
    %c0_i32 = arith.constant 0 : i32
    %c0_i32_0 = arith.constant 0 : i32
    %c0_i32_1 = arith.constant 0 : i32
    return %c0_i32, %c0_i32_0 : i32, i32
  }
  func.func @transform_9(%arg0: i32) -> (i32, i32) {
    %c0_i32 = arith.constant 0 : i32
    %c0_i32_0 = arith.constant 0 : i32
    return %arg0, %c0_i32 : i32, i32
  }
}

</mosaic_0001>

<bundles_post_ra>
// kernel: news_encoder_single_list.1
= control target key start
LH: loop header
LB: loop body
LE: loop exit
PB: predicated region body
PF: predicated region fallthrough
CT: control target
= control target key end

     0   :  { %v606_v2 = vmov 0   ;;  %vm67_vm0 = vcmask 261120   ;;  %s757_s0 = inlined_call_operand.vmem [shape: bf16[2,8,32], index: 0, kind: input, shape index: {}]   ;;  %s758_s1 = inlined_call_operand.vmem [shape: bf16[32,256], index: 1, kind: input, shape index: {}]   ;;  %s759_s2 = inlined_call_operand.vmem [shape: f32[1,128], index: 2, kind: input, shape index: {}]   ;;  %s760_s3 = inlined_call_operand.vmem [shape: f32[1,128], index: 3, kind: input, shape index: {}]   ;;  %s761_s4 = inlined_call_operand.vmem [shape: bf16[32,128], index: 4, kind: input, shape index: {}]   ;;  %s762_s5 = inlined_call_operand.vmem [shape: f32[1,128], index: 5, kind: input, shape index: {}]   ;;  %s763_s6 = inlined_call_operand.vmem [shape: f32[1,128], index: 6, kind: input, shape index: {}]   ;;  %s764_s7 = inlined_call_operand.vmem [shape: bf16[64,128], index: 7, kind: input, shape index: {}]   ;;  %s765_s8 = inlined_call_operand.vmem [shape: f32[1,128], index: 8, kind: input, shape index: {}]   ;;  %s766_s9 = inlined_call_operand.hbm [shape: f32[2,128], index: 9, kind: output, shape index: {}]  }
   0x1   :  { %v546_v0 = vld [vmem:[%s758_s1 + $0x14] ss:$8 sps:$4 sm:$0xff]   ;;  %v548_v1 = vld [vmem:[%s758_s1 + $0x10] ss:$8 sps:$4 sm:$0xff]   ;;  %103 = vmatprep.mubr.bf16.mxu1 %v606_v2  ;;  %v549_v3 = vld [vmem:[%s758_s1 + $0x4] ss:$8 sps:$4 sm:$0xff]  }
   0x2   :  { %83 = vmatprep.subr.bf16.mxu1 %v546_v0  ;;  %v551_v4 = vld [vmem:[%s758_s1] ss:$8 sps:$4 sm:$0xff]  }
   0x3   :  { %v677_v5 = vld [vmem:[%s757_s0] sm:$0xff]   ;;  %84 = vmatpush1.bf16.msra.mxu1 %v548_v1 }
   0x4   :  { %85 = vmatprep.subr.bf16.mxu1 %v549_v3 }
   0x7   :  { %86 = vmatpush1.bf16.msra.mxu1 %v551_v4 }
   0x8   :  { %14 = vsyncpa [#allocation3], 0  ;;  %v499_v6 = vld [vmem:[%s759_s2] ss:$0 sm:$0xff]  ;;  %v553_v17 = vld [vmem:[%s761_s4 + $0x8] sm:$0xff]   ;;  %v607_v18 = vmov 0.0   ;;  %v36_v54 = vunpack.c.l.bf16 %v677_v5  ;;  %v37_v57 = vunpack.c.h.bf16 %v677_v5 }
   0x9   :  { %v500_v12 = vld [vmem:[%s760_s3] ss:$0 sm:$0xff]  ;;  %520 = vmatprep.subr.bf16.mxu1 %v607_v18  ;;  %vm608_vm1 = vmmov 0   ;;  %528 = vmatprep.subr.bf16.mxu0 %v607_v18  ;;  %vm200_vm2 = vcmask 1041409   ;;  %vm434_vm3 = vcmask 523264   ;;  %s611_s13 = smov [#allocation2]  }
   0xa   :  { %498 = vmatmul.mubr.msk.bf16.vlgmr.msra.gmra.mxu1 %vm67_vm0, %v677_v5  ;;  %v554_v19 = vld [vmem:[%s761_s4] sm:$0xff]   ;;  %536 = vmatprep.mubr.msk.bf16.mxu0 %vm608_vm1, %v607_v18  ;;  %s485_s14 = sshll.u32 %s611_s13, 4  ;;  %s486_s14 = int_to_ptr.vmem [resolvable:$true] %s485_s14 }
   0xb   :  { %524 = vmatprep.mubr.msk.bf16.mxu1 %vm608_vm1, %v607_v18  ;;  %521 = vmatpush3.bf16.msra.mxu1 %v553_v17  ;;  %s584_s15 = scalar_lea.vmem %s486_s14, 32  ;;  %p589_p1 = scmp.lt.s32.totalorder %s486_s14, %s486_s14 }
   0xc   :  { %522 = vmatprep.subr.bf16.mxu1 %v607_v18  ;;  %p585_p0 = scmp.ne.s32.totalorder %s486_s14, %s584_s15  ;;  %p590_p2 = scmp.lt.s32.totalorder %s584_s15, %s584_s15 }
   0xe   :  { %p591_p3 = por %p590_p2, %p589_p1 }
   0xf   :  { %523 = vmatpush3.bf16.msra.mxu1 %v554_v19 }
  0x10   :  { %p592_p4 = pnand %p591_p3, %p585_p0 }
  0xca   :  { %v105_v7 = vpop.f32.mrf.mxu1 }
  0xcb   :  { %v121_v8 = vadd.f32 %v499_v6, %v105_v7 }
  0xcc   :  { %v684_v9 = vpop.f32.mrf.mxu1 }
  0xcd   :  { %560 = vtanh.f32 %v121_v8 }
  0xce   :  { %v109_v10 = vpop.f32.mrf.mxu1 }
  0xcf   :  { %v122_v11 = vadd.f32 %v499_v6, %v109_v10 }
  0xd1   :  { %562 = vtanh.f32 %v122_v11 }
  0xda   :  { %v561_v13 = vpop.eup %560 }
  0xdb   :  { %v132_v14 = vmul.f32 %v561_v13, %v500_v12 }
  0xdd   :  { %134 = vadd.xlane.f32.xlu0 %v132_v14 }
  0xde   :  { %v563_v15 = vpop.eup %562 }
  0xdf   :  { %v133_v16 = vmul.f32 %v563_v15, %v500_v12 }
  0xe1   :  { %136 = vadd.xlane.f32.xlu0 %v133_v16 }
 0x166   :  { %v135_v20 = vpop.xlane.xlu0 %134 }
 0x167   :  { %v138_v21 = vrot.slane %v135_v20, 4 }
 0x169   :  { %v139_v22 = vmax.f32 %v135_v20, %v138_v21  ;;  %v609_v21 = vmov 1966171168  }
 0x16a   :  { %v137_v23 = vpop.xlane.xlu0 %136 }
 0x16b   :  { %v140_v24 = vrot.slane %v139_v22, 2  ;;  %v144_v25 = vrot.slane %v137_v23, 4 }
 0x16d   :  { %v141_v26 = vmax.f32 %v139_v22, %v140_v24  ;;  %v145_v27 = vmax.f32 %v137_v23, %v144_v25  ;;  %v260_v22 = vunpack.c.l.s4 %v609_v21 }
 0x16f   :  { %v142_v28 = vrot.slane %v141_v26, 1  ;;  %v146_v29 = vrot.slane %v145_v27, 2  ;;  %v261_v24 = vunpack.c.0.s8 %v260_v22 }
 0x171   :  { %v143_v30 = vmax.f32 %v141_v26, %v142_v28  ;;  %v147_v31 = vmax.f32 %v145_v27, %v146_v29  ;;  %v111_v27 = vpop.f32.mrf.mxu1 }
 0x173   :  { %v150_v32 = vsub.f32 %v135_v20, %v143_v30  ;;  %v148_v33 = vrot.slane %v147_v31, 1 }
 0x175   :  { %v152_v34 = vmul.f32 1.442695, %v150_v32  ;;  %v149_v35 = vmax.f32 %v147_v31, %v148_v33 }
 0x177   :  { %564 = vpow2.f32 %v152_v34  ;;  %v151_v36 = vsub.f32 %v137_v23, %v149_v35  ;;  %v262_v23 = vlaneseq }
 0x179   :  { %v154_v37 = vmul.f32 1.442695, %v151_v36  ;;  %v263_v25 = vshrl.u32 %v262_v23, 7 }
 0x17b   :  { %566 = vpow2.f32 %v154_v37  ;;  %v264_v26 = vsub.s32 %v261_v24, %v263_v25  ;;  %v283_v30 = vsub.s32 0, %v263_v25  ;;  %v504_v37 = vld [vmem:[%s762_s5] ss:$0 sm:$0xff] }
 0x184   :  { %v565_v38 = vpop.eup %564 }
 0x185   :  { %v156_v39 = vrot.slane %v565_v38, 4 }
 0x187   :  { %v157_v40 = vadd.f32 %v565_v38, %v156_v39 }
 0x188   :  { %v567_v41 = vpop.eup %566 }
 0x189   :  { %v158_v42 = vrot.slane %v157_v40, 2  ;;  %v162_v43 = vrot.slane %v567_v41, 4 }
 0x18b   :  { %v159_v44 = vadd.f32 %v158_v42, %v157_v40  ;;  %v163_v45 = vadd.f32 %v567_v41, %v162_v43 }
 0x18d   :  { %v160_v46 = vrot.slane %v159_v44, 1  ;;  %v164_v47 = vrot.slane %v163_v45, 2 }
 0x18f   :  { %v161_v48 = vadd.f32 %v160_v46, %v159_v44  ;;  %v165_v49 = vadd.f32 %v164_v47, %v163_v45  ;;  %v505_v44 = vld [vmem:[%s763_s6] ss:$0 sm:$0xff] }
 0x191   :  { %v168_v50 = vadd.f32 1e-08, %v161_v48  ;;  %v166_v51 = vrot.slane %v165_v49, 1 }
 0x193   :  { %568 = vrcp.f32 %v168_v50  ;;  %v167_v52 = vadd.f32 %v166_v51, %v165_v49  ;;  %v555_v49 = vld [vmem:[%s764_s7 + $0x18] sm:$0xff]   ;;  %v557_v50 = vld [vmem:[%s764_s7 + $0x8] sm:$0xff]  }
 0x194   :  { %529 = vmatpush3.bf16.msra.mxu0 %v555_v49 }
 0x195   :  { %v169_v53 = vadd.f32 1e-08, %v167_v52  ;;  %530 = vmatprep.subr.bf16.mxu0 %v607_v18 }
 0x197   :  { %570 = vrcp.f32 %v169_v53 }
 0x1a0   :  { %v569_v55 = vpop.eup %568 }
 0x1a1   :  { %v171_v56 = vmul.f32 %v569_v55, %v565_v38 }
 0x1a3   :  { %v174_v58 = vmul.f32 %v171_v56, %v36_v54 }
 0x1a4   :  { %v571_v59 = vpop.eup %570 }
 0x1a5   :  { %v173_v60 = vmul.f32 %v571_v59, %v567_v41  ;;  %v176_v61 = vsel %vm67_vm0, %v174_v58, 0.0 }
 0x1a6   :  { %v177_v62 = vrot.slane %v176_v61, 4 }
 0x1a7   :  { %v175_v63 = vmul.f32 %v173_v60, %v37_v57 }
 0x1a8   :  { %v178_v0 = vadd.f32 %v177_v62, %v176_v61 }
 0x1a9   :  { %v183_v1 = vsel %vm67_vm0, %v175_v63, 0.0 }
 0x1aa   :  { %v179_v2 = vrot.slane %v178_v0, 2  ;;  %v184_v3 = vrot.slane %v183_v1, 4 }
 0x1ac   :  { %v180_v4 = vadd.f32 %v179_v2, %v178_v0  ;;  %v185_v6 = vadd.f32 %v184_v3, %v183_v1 }
 0x1ae   :  { %v181_v7 = vrot.slane %v180_v4, 1  ;;  %v186_v8 = vrot.slane %v185_v6, 2 }
 0x1b0   :  { %v708_v10 = vadd.f32 %v181_v7, %v180_v4  ;;  %v187_v11 = vadd.f32 %v186_v8, %v185_v6 }
 0x1b2   :  { %v188_v12 = vrot.slane %v187_v11, 1  ;;  %v190_v14 = vpack.c.bf16 %v708_v10, %v708_v10 }
 0x1b4   :  { %v710_v13 = vadd.f32 %v188_v12, %v187_v11  ;;  %v198_v16 = vunpack.c.l.b16 %v190_v14 }
 0x1b6   :  { %v191_v15 = vpack.c.bf16 %v710_v13, %v710_v13 }
 0x1b8   :  { %v199_v17 = vunpack.c.l.b16 %v191_v15 }
 0x1ba   :  { %v201_v19 = vsel %vm200_vm2, %v199_v17, %v198_v16 }
 0x1bb   :  { %v202_v20 = vpack.c.b16 %v201_v19, %v201_v19 }
 0x1bd   :  { %525 = vmatmul.mubr.msk.bf16.vlgmr.msra.gmra.mxu1 %vm67_vm0, %v202_v20 }
 0x27d   :  { %v252_v28 = vpop.f32.mrf.mxu1 }
 0x27e   :  { %v265_v29 = vrot.slane %v252_v28, %v264_v26 }
 0x27f   :  { %v526_v31 = vpop.f32.mrf.mxu1 }
 0x280   :  { %v266_v32 = vcombine.high %v265_v29, %v265_v29  ;;  %v273_v33 = vrot.slane %v265_v29, %v264_v26 }
 0x281   :  { %v255_v34 = vpop.f32.mrf.mxu1 }
 0x282   :  { %v280_v35 = vrot.slane %v266_v32, %v264_v26  ;;  %v284_v36 = vrot.slane %v273_v33, %v283_v30 }
 0x283   :  { %v527_v38 = vpop.f32.mrf.mxu1 }
 0x284   :  { %v288_v39 = vrot.slane %v280_v35, %v283_v30  ;;  %v291_v40 = vadd.f32 %v284_v36, %v684_v9  ;;  %v556_v9 = vld [vmem:[%s764_s7 + $0x10] sm:$0xff]  }
 0x285   :  { %531 = vmatpush3.bf16.msra.mxu0 %v556_v9 }
 0x286   :  { %v292_v41 = vadd.f32 %v288_v39, %v111_v27  ;;  %v300_v42 = vadd.f32 %v504_v37, %v291_v40  ;;  %532 = vmatprep.subr.bf16.mxu0 %v607_v18  ;;  %v558_v40 = vld [vmem:[%s764_s7] sm:$0xff]   ;;  %s610_s7 = smov 32  }
 0x288   :  { %v301_v43 = vadd.f32 %v504_v37, %v292_v41  ;;  %572 = vtanh.f32 %v300_v42 }
 0x289   :  { %533 = vmatpush3.bf16.msra.mxu0 %v557_v50 }
 0x28a   :  { %574 = vtanh.f32 %v301_v43  ;;  %534 = vmatprep.subr.bf16.mxu0 %v607_v18 }
 0x28d   :  { %535 = vmatpush3.bf16.msra.mxu0 %v558_v40 }
 0x295   :  { %v573_v45 = vpop.eup %572 }
 0x296   :  { %v311_v46 = vmul.f32 %v573_v45, %v505_v44 }
 0x297   :  { %v575_v47 = vpop.eup %574 }
 0x298   :  { %313 = vadd.xlane.f32.xlu1 %v311_v46  ;;  %v312_v48 = vmul.f32 %v575_v47, %v505_v44 }
 0x29c   :  { %315 = vadd.xlane.f32.xlu1 %v312_v48 }
 0x321   :  { %v314_v51 = vpop.xlane.xlu1 %313 }
 0x322   :  { %v317_v52 = vrot.slane %v314_v51, 4 }
 0x324   :  { %v318_v53 = vmax.f32 %v314_v51, %v317_v52 }
 0x325   :  { %v316_v55 = vpop.xlane.xlu1 %315 }
 0x326   :  { %v319_v56 = vrot.slane %v318_v53, 2  ;;  %v323_v58 = vrot.slane %v316_v55, 4 }
 0x328   :  { %v320_v59 = vmax.f32 %v318_v53, %v319_v56  ;;  %v324_v60 = vmax.f32 %v316_v55, %v323_v58 }
 0x32a   :  { %v321_v61 = vrot.slane %v320_v59, 1  ;;  %v325_v62 = vrot.slane %v324_v60, 2 }
 0x32c   :  { %v322_v63 = vmax.f32 %v320_v59, %v321_v61  ;;  %v326_v0 = vmax.f32 %v324_v60, %v325_v62 }
 0x32e   :  { %v329_v1 = vsub.f32 %v314_v51, %v322_v63  ;;  %v327_v2 = vrot.slane %v326_v0, 1 }
 0x330   :  { %v331_v3 = vmul.f32 1.442695, %v329_v1  ;;  %v328_v4 = vmax.f32 %v326_v0, %v327_v2 }
 0x332   :  { %576 = vpow2.f32 %v331_v3  ;;  %v330_v6 = vsub.f32 %v316_v55, %v328_v4 }
 0x334   :  { %v333_v7 = vmul.f32 1.442695, %v330_v6 }
 0x336   :  { %578 = vpow2.f32 %v333_v7 }
 0x33f   :  { %v577_v18 = vpop.eup %576 }
 0x340   :  { %v335_v8 = vrot.slane %v577_v18, 4 }
 0x342   :  { %v336_v11 = vadd.f32 %v577_v18, %v335_v8 }
 0x343   :  { %v579_v12 = vpop.eup %578 }
 0x344   :  { %v341_v14 = vrot.slane %v579_v12, 4  ;;  %v337_v15 = vrot.slane %v336_v11, 2 }
 0x346   :  { %v342_v16 = vadd.f32 %v579_v12, %v341_v14  ;;  %v338_v17 = vadd.f32 %v337_v15, %v336_v11 }
 0x348   :  { %v343_v19 = vrot.slane %v342_v16, 2  ;;  %v339_v20 = vrot.slane %v338_v17, 1 }
 0x34a   :  { %v340_v21 = vadd.f32 %v339_v20, %v338_v17  ;;  %v344_v22 = vadd.f32 %v343_v19, %v342_v16 }
 0x34c   :  { %v345_v23 = vrot.slane %v344_v22, 1  ;;  %v347_v24 = vadd.f32 1e-08, %v340_v21 }
 0x34e   :  { %v346_v25 = vadd.f32 %v345_v23, %v344_v22  ;;  %580 = vrcp.f32 %v347_v24 }
 0x350   :  { %v348_v26 = vadd.f32 1e-08, %v346_v25 }
 0x352   :  { %582 = vrcp.f32 %v348_v26 }
 0x35b   :  { %v581_v27 = vpop.eup %580 }
 0x35c   :  { %v350_v28 = vmul.f32 %v581_v27, %v577_v18 }
 0x35e   :  { %v367_v29 = vmul.f32 %v350_v28, %v36_v54  ;;  %v353_v30 = vrot.slane %v350_v28, 4 }
 0x35f   :  { %v583_v31 = vpop.eup %582 }
 0x360   :  { %v352_v32 = vmul.f32 %v583_v31, %v579_v12  ;;  %v369_v33 = vsel %vm67_vm0, %v367_v29, 0.0  ;;  %v354_v34 = vadd.f32 %v353_v30, %v350_v28 }
 0x361   :  { %v370_v35 = vrot.slane %v369_v33, 4 }
 0x362   :  { %v368_v36 = vmul.f32 %v352_v32, %v37_v57  ;;  %v355_v37 = vrot.slane %v354_v34, 2  ;;  %v359_v38 = vrot.slane %v352_v32, 4 }
 0x363   :  { %v371_v39 = vadd.f32 %v370_v35, %v369_v33 }
 0x364   :  { %v376_v41 = vsel %vm67_vm0, %v368_v36, 0.0  ;;  %v356_v54 = vadd.f32 %v355_v37, %v354_v34  ;;  %v360_v42 = vadd.f32 %v359_v38, %v352_v32 }
 0x365   :  { %v372_v43 = vrot.slane %v371_v39, 2  ;;  %v377_v44 = vrot.slane %v376_v41, 4 }
 0x366   :  { %v357_v45 = vrot.slane %v356_v54, 1  ;;  %v361_v46 = vrot.slane %v360_v42, 2 }
 0x367   :  { %v373_v47 = vadd.f32 %v372_v43, %v371_v39  ;;  %v378_v48 = vadd.f32 %v377_v44, %v376_v41 }
 0x368   :  { %v362_v5 = vadd.f32 %v361_v46, %v360_v42  ;;  %v358_v49 = vadd.f32 %v357_v45, %v356_v54 }
 0x369   :  { %v379_v57 = vrot.slane %v378_v48, 2  ;;  %v374_v50 = vrot.slane %v373_v47, 1 }
 0x36a   :  { %v363_v9 = vrot.slane %v362_v5, 1  ;;  %v365_v55 = vmul.f32 %v358_v49, %v708_v10  ;;  %v506_v10 = vld [vmem:[%s765_s8] ss:$0 sm:$0xff] }
 0x36b   :  { %v380_v51 = vadd.f32 %v379_v57, %v378_v48  ;;  %v375_v58 = vadd.f32 %v374_v50, %v373_v47 }
 0x36c   :  { %v364_v52 = vadd.f32 %v363_v9, %v362_v5 }
 0x36d   :  { %v381_v53 = vrot.slane %v380_v51, 1 }
 0x36e   :  { %v366_v56 = vmul.f32 %v364_v52, %v710_v13 }
 0x36f   :  { %v382_v59 = vadd.f32 %v381_v53, %v380_v51 }
 0x370   :  { %v385_v60 = vsel %vm200_vm2, %v366_v56, %v365_v55 }
 0x371   :  { %v389_v61 = vsel %vm200_vm2, %v382_v59, %v375_v58 }
 0x372   :  { %390 = vrot.lane.b32.xlu0 %v389_v61, %s610_s7 }
 0x3e4   :  { %v391_v62 = vpop.permute.xlu0 %390 }
 0x3e5   :  { %v393_v63 = vsel %vm67_vm0, %v385_v60, %v391_v62 }
 0x3e6   :  { %v394_v0 = vpack.c.bf16 %v393_v63, %v393_v63 }
 0x3e8   :  { %537 = vmatmul.mubr.msk.bf16.vlgmr.msra.gmra.mxu0 %vm434_vm3, %v394_v0 }
 0x4a8   :  { %v472_v13 = vpop.f32.mrf.mxu0 }
 0x4a9   :  { %v473_v1 = vadd.f32 %v506_v10, %v472_v13 }
 0x4aa   :  { %v538_v2 = vpop.f32.mrf.mxu0 }
 0x4ab   :  { %478 = vst [vmem:[#allocation2] sm:$0x3] %v473_v1 }
 0x4ac   :  { %v475_v3 = vpop.f32.mrf.mxu0 }
 0x4ad   :  { %595 = shalt.err (!%p592_p4)
}
 0x4ae   :  { %488 = dma.vmem_to_hbm [thread:$0]  %s486_s14, 32, %s766_s9, [#allocation3]   ;;  %v539_v4 = vpop.f32.mrf.mxu0 }
 0x4af   :  { %604 = dma.done.wait [#allocation3], 32  }
 0x4b0   :  { %605 = vsyncadd [#allocation3], 4294967264 }
 0x4b1   :  { %492 = vsyncpa [#allocation3], 1 }

</bundles_post_ra>
